<compile_context>
chip_gen: v6e
topology: v6e:2x2x1
jax: 0.10.0
libtpu: 0.0.40
codegen_flags: <defaults>
</compile_context>

<pallas_src>
import functools

import jax
import jax.numpy as jnp
from jax import lax
from jax.experimental import pallas as pl
from jax.experimental.pallas import tpu as pltpu

NEG_INF = -1e30


def mha_kernel(x_ref, wq_ref, wk_ref, wv_ref, wp_ref, bp_ref, o_ref,
               k_scr, v_scr, *, n_head, head_size, scale, tq):
    qi = pl.program_id(1)
    T, C = x_ref.shape                                   # full sequence block

    # ---- K / V projections: computed once per batch (qi == 0), kept in VMEM
    # scratch across all query tiles of this batch. ----
    @pl.when(qi == 0)
    def _():
        x_all = x_ref[...]                               # (T, C) bf16
        k_scr[...] = jnp.dot(x_all, wk_ref[...],
                             preferred_element_type=jnp.float32
                             ).astype(jnp.bfloat16)
        v_scr[...] = jnp.dot(x_all, wv_ref[...],
                             preferred_element_type=jnp.float32
                             ).astype(jnp.bfloat16)

    # ---- Q projection for this query tile, sliced from the resident x block
    # (no separate xq input stream). Fold the score scale into q here. ----
    row0 = pl.multiple_of(qi * tq, tq)
    xq = x_ref[pl.ds(row0, tq), :]                       # (tq, C) bf16
    q = (jnp.dot(xq, wq_ref[...], preferred_element_type=jnp.float32)
         * scale).astype(jnp.bfloat16)                   # (tq, C)

    k = k_scr[...]                                       # (T, C) bf16
    v = v_scr[...]                                       # (T, C) bf16

    # Causal mask for this query tile (absolute row positions).
    q_pos = qi * tq + lax.broadcasted_iota(jnp.int32, (tq, T), 0)
    k_pos = lax.broadcasted_iota(jnp.int32, (tq, T), 1)
    causal = k_pos <= q_pos                              # (tq, T)

    head_outs = []
    for h in range(n_head):                              # static unroll; small
        lo = h * head_size
        hi = lo + head_size
        qh = q[:, lo:hi]                                 # (tq, hs) bf16
        kh = k[:, lo:hi]                                 # (T,  hs) bf16
        vh = v[:, lo:hi]                                 # (T,  hs) bf16

        # scores = (q * scale) @ k^T  (contract over head dim), f32 accumulate.
        s = lax.dot_general(qh, kh,
                            dimension_numbers=(((1,), (1,)), ((), ())),
                            preferred_element_type=jnp.float32)   # (tq, T)
        s = jnp.where(causal, s, NEG_INF)

        # Numerically-stable softmax; normalization deferred past attn@V.
        m = jnp.max(s, axis=-1, keepdims=True)
        p = jnp.exp(s - m)
        denom = jnp.sum(p, axis=-1, keepdims=True)
        oh = jnp.dot(p.astype(jnp.bfloat16), vh,
                     preferred_element_type=jnp.float32)          # (tq, hs)
        oh = oh * pl.reciprocal(denom, approx=True)
        head_outs.append(oh.astype(jnp.bfloat16))

    # Single full-width projection on the lane-dense concat of head outputs
    # (K = C) instead of n_head skinny K = head_size matmuls.
    concat = jnp.concatenate(head_outs, axis=-1)         # (tq, C) bf16
    out = jnp.dot(concat, wp_ref[...],
                  preferred_element_type=jnp.float32) + bp_ref[...]
    o_ref[...] = out.astype(o_ref.dtype)


def multi_head_attention(x, wq, wk, wv, wp, bp, *, n_head, tq=None):
    """x: (B, T, C) f32.  wq/wk/wv: (C, C) head-stacked (in, out) layout.
    wp: (C, C), bp: (C,).  Returns (B, T, C) in x.dtype (eval-mode forward).
    NOTE: scores are scaled by C**-0.5 (n_embd), matching the PyTorch module."""
    B, T, C = x.shape
    assert C % n_head == 0
    head_size = C // n_head
    scale = float(C) ** -0.5

    # Query-row tile: multiple of 8 sublanes (or the full sequence).
    if tq is None:
        tq = T if T <= 128 else 128
    assert T % tq == 0 and (tq % 8 == 0 or tq == T)
    nq = T // tq

    # bf16 operands for the MXU; halves HBM/VMEM traffic of x and weights.
    x_bf = x.astype(jnp.bfloat16)
    wq_bf = wq.astype(jnp.bfloat16)
    wk_bf = wk.astype(jnp.bfloat16)
    wv_bf = wv.astype(jnp.bfloat16)
    wp_bf = wp.astype(jnp.bfloat16)
    bp2 = bp.reshape(1, C).astype(jnp.float32)

    kernel = functools.partial(mha_kernel, n_head=n_head,
                               head_size=head_size, scale=scale, tq=tq)

    # Explicit VMEM budget from the actual resident set (2x headroom).
    bf_b, f32_b = 2, 4
    resident = (2 * T * C * bf_b            # x block (double-buffered)
                + 2 * 4 * C * C * bf_b      # Wq/Wk/Wv/Wp (double-buffered)
                + 2 * C * f32_b             # bias
                + 2 * T * C * bf_b          # K/V scratch (single-buffered)
                + 2 * tq * C * f32_b)       # output tile (double-buffered)
    transient = (2 * T * C * f32_b          # f32 K/V matmul results at qi == 0
                 + 3 * tq * T * f32_b       # per-head score / prob temporaries
                 + 3 * tq * C * f32_b)      # q / concat / projection temps
    vmem_limit = int(min(64 * 1024 * 1024,
                         max(16 * 1024 * 1024, 2 * (resident + transient))))

    # Advisory cost estimate (K/V projected once per batch, not per tile).
    flops = 8 * B * T * C * C + 4 * B * T * T * C
    transcendentals = B * n_head * T * T
    bytes_accessed = (B * T * C * 2 + 4 * C * C * 2 + C * 4
                      + B * T * C * x.dtype.itemsize)
    cost = pl.CostEstimate(flops=flops, transcendentals=transcendentals,
                           bytes_accessed=bytes_accessed)

    out = pl.pallas_call(
        kernel,
        out_shape=jax.ShapeDtypeStruct((B, T, C), x.dtype),
        grid=(B, nq),
        in_specs=[
            # full-sequence x: constant across qi -> stays VMEM-resident,
            # re-DMA'd only when the batch index changes.
            pl.BlockSpec((pl.Squeezed(), T, C), lambda b, qi: (b, 0, 0)),
            # weights / bias: constant index maps, VMEM-resident.
            pl.BlockSpec((C, C), lambda b, qi: (0, 0)),   # Wq
            pl.BlockSpec((C, C), lambda b, qi: (0, 0)),   # Wk
            pl.BlockSpec((C, C), lambda b, qi: (0, 0)),   # Wv
            pl.BlockSpec((C, C), lambda b, qi: (0, 0)),   # Wproj
            pl.BlockSpec((1, C), lambda b, qi: (0, 0)),   # bproj
        ],
        out_specs=pl.BlockSpec((pl.Squeezed(), tq, C), lambda b, qi: (b, qi, 0)),
        scratch_shapes=[pltpu.VMEM((T, C), jnp.bfloat16),   # K (per batch)
                        pltpu.VMEM((T, C), jnp.bfloat16)],  # V (per batch)
        compiler_params=pltpu.CompilerParams(
            # qi must be "arbitrary": K/V scratch is reused across query tiles.
            dimension_semantics=("parallel", "arbitrary"),
            vmem_limit_bytes=vmem_limit),
        cost_estimate=cost,
    )(x_bf, wq_bf, wk_bf, wv_bf, wp_bf, bp2)

    return out


def mha_reference(x, wq, wk, wv, wp, bp, *, n_head):
    """Plain-JAX f32 reference (eval-mode PyTorch semantics)."""
    B, T, C = x.shape
    hs = C // n_head
    q = (x @ wq).reshape(B, T, n_head, hs).transpose(0, 2, 1, 3)
    k = (x @ wk).reshape(B, T, n_head, hs).transpose(0, 2, 1, 3)
    v = (x @ wv).reshape(B, T, n_head, hs).transpose(0, 2, 1, 3)
    s = jnp.einsum('bhqd,bhkd->bhqk', q, k) * (C ** -0.5)
    mask = jnp.tril(jnp.ones((T, T), bool))
    s = jnp.where(mask, s, -jnp.inf)
    attn = jax.nn.softmax(s, axis=-1)
    o = jnp.einsum('bhqk,bhkd->bhqd', attn, v)
    o = o.transpose(0, 2, 1, 3).reshape(B, T, C)
    return o @ wp + bp


if __name__ == "__main__":
    # Small shapes consistent with the module (C = n_embd, H = n_head,
    # C % H == 0).  tq=8 < T so the multi-tile / K-V-scratch-reuse path runs.
    B, T, C, H = 2, 16, 64, 4
    TQ = 8
    key = jax.random.PRNGKey(0)
    kx, kq, kk, kv, kp, kb = jax.random.split(key, 6)

    x = jax.random.normal(kx, (B, T, C), jnp.float32)
    bound = 1.0 / (C ** 0.5)          # nn.Linear default init bound (fan_in = C)
    wq = jax.random.uniform(kq, (C, C), jnp.float32, -bound, bound)
    wk = jax.random.uniform(kk, (C, C), jnp.float32, -bound, bound)
    wv = jax.random.uniform(kv, (C, C), jnp.float32, -bound, bound)
    wp = jax.random.uniform(kp, (C, C), jnp.float32, -bound, bound)
    bp = jax.random.uniform(kb, (C,), jnp.float32, -bound, bound)

    y = multi_head_attention(x, wq, wk, wv, wp, bp, n_head=H, tq=TQ)
    jax.block_until_ready(y)

    ref = mha_reference(x, wq, wk, wv, wp, bp, n_head=H)
    max_err = float(jnp.max(jnp.abs(y - ref)))
    assert jnp.allclose(y, ref, atol=5e-2, rtol=5e-2), f"max_err={max_err}"

    print("KERNEL_OK")
</pallas_src>

<mosaic_0001>
module attributes {stable_mosaic.version = 11 : i64} {
  func.func @mha_kernel(%arg0: i32, %arg1: i32, %arg2: memref<1x16x64xbf16, #tpu.memory_space<vmem>>, %arg3: memref<64x64xbf16, #tpu.memory_space<vmem>>, %arg4: memref<64x64xbf16, #tpu.memory_space<vmem>>, %arg5: memref<64x64xbf16, #tpu.memory_space<vmem>>, %arg6: memref<64x64xbf16, #tpu.memory_space<vmem>>, %arg7: memref<1x64xf32, #tpu.memory_space<vmem>>, %arg8: memref<1x8x64xf32, #tpu.memory_space<vmem>>, %arg9: memref<16x64xbf16, #tpu.memory_space<vmem>>, %arg10: memref<16x64xbf16, #tpu.memory_space<vmem>>) attributes {dimension_semantics = [#tpu.dimension_semantics<parallel>, #tpu.dimension_semantics<arbitrary>], iteration_bounds = array<i64: 2, 2>, scalar_prefetch = 0 : i64, scratch_operands = 2 : i64, tpu.core_type = #tpu.core_type<tc>, window_params = [{transform_indices = @transform_0, window_bounds = array<i64: 1, 16, 64>}, {pipeline_mode = #tpu.pipeline_mode<synchronous>, transform_indices = @transform_1, window_bounds = array<i64: 64, 64>}, {pipeline_mode = #tpu.pipeline_mode<synchronous>, transform_indices = @transform_2, window_bounds = array<i64: 64, 64>}, {pipeline_mode = #tpu.pipeline_mode<synchronous>, transform_indices = @transform_3, window_bounds = array<i64: 64, 64>}, {pipeline_mode = #tpu.pipeline_mode<synchronous>, transform_indices = @transform_4, window_bounds = array<i64: 64, 64>}, {pipeline_mode = #tpu.pipeline_mode<synchronous>, transform_indices = @transform_5, window_bounds = array<i64: 1, 64>}, {transform_indices = @transform_6, window_bounds = array<i64: 1, 8, 64>}]} {
    %c0_i32 = arith.constant 0 : i32
    %0 = arith.cmpi eq, %arg1, %c0_i32 : i32
    %1 = arith.extui %0 : i1 to i32
    %c0_i32_0 = arith.constant 0 : i32
    %2 = arith.cmpi ne, %1, %c0_i32_0 : i32
    scf.if %2 {
      %c0_38 = arith.constant 0 : index
      %c0_39 = arith.constant 0 : index
      %c0_40 = arith.constant 0 : index
      %106 = vector.load %arg2[%c0_38, %c0_39, %c0_40] : memref<1x16x64xbf16, #tpu.memory_space<vmem>>, vector<1x16x64xbf16>
      %107 = vector.shape_cast %106 : vector<1x16x64xbf16> to vector<16x64xbf16>
      %c0_41 = arith.constant 0 : index
      %c0_42 = arith.constant 0 : index
      %108 = vector.load %arg4[%c0_41, %c0_42] : memref<64x64xbf16, #tpu.memory_space<vmem>>, vector<64x64xbf16>
      %cst_43 = arith.constant dense<0.000000e+00> : vector<16x64xf32>
      %109 = tpu.matmul %107, %108, %cst_43 {dimension_numbers = #tpu.dot_dimension_numbers<[1], [0], [0], [1], [0, 0, 1, 1], [], []>} : vector<16x64xbf16>, vector<64x64xbf16>, vector<16x64xf32> -> vector<16x64xf32>
      %110 = arith.truncf %109 : vector<16x64xf32> to vector<16x64xbf16>
      %c0_44 = arith.constant 0 : index
      %c0_45 = arith.constant 0 : index
      %111 = vector.load %arg9[%c0_44, %c0_45] : memref<16x64xbf16, #tpu.memory_space<vmem>>, vector<16x64xbf16>
      tpu.vector_store %arg9[%c0_44, %c0_45], %110 {strides = array<i32>} : memref<16x64xbf16, #tpu.memory_space<vmem>>, vector<16x64xbf16>,
      %c0_46 = arith.constant 0 : index
      %c0_47 = arith.constant 0 : index
      %112 = vector.load %arg5[%c0_46, %c0_47] : memref<64x64xbf16, #tpu.memory_space<vmem>>, vector<64x64xbf16>
      %cst_48 = arith.constant dense<0.000000e+00> : vector<16x64xf32>
      %113 = tpu.matmul %107, %112, %cst_48 {dimension_numbers = #tpu.dot_dimension_numbers<[1], [0], [0], [1], [0, 0, 1, 1], [], []>} : vector<16x64xbf16>, vector<64x64xbf16>, vector<16x64xf32> -> vector<16x64xf32>
      %114 = arith.truncf %113 : vector<16x64xf32> to vector<16x64xbf16>
      %c0_49 = arith.constant 0 : index
      %c0_50 = arith.constant 0 : index
      %115 = vector.load %arg10[%c0_49, %c0_50] : memref<16x64xbf16, #tpu.memory_space<vmem>>, vector<16x64xbf16>
      tpu.vector_store %arg10[%c0_49, %c0_50], %114 {strides = array<i32>} : memref<16x64xbf16, #tpu.memory_space<vmem>>, vector<16x64xbf16>,
    } else {
    }
    %c8_i32 = arith.constant 8 : i32
    %3 = arith.muli %arg1, %c8_i32 : i32
    %4 = tpu.assume_multiple %3, 8 : i32
    %c0 = arith.constant 0 : index
    %5 = arith.index_cast %4 : i32 to index
    %c0_1 = arith.constant 0 : index
    %6 = vector.load %arg2[%c0, %5, %c0_1] : memref<1x16x64xbf16, #tpu.memory_space<vmem>>, vector<1x8x64xbf16>
    %7 = vector.shape_cast %6 : vector<1x8x64xbf16> to vector<8x64xbf16>
    %c0_2 = arith.constant 0 : index
    %c0_3 = arith.constant 0 : index
    %8 = vector.load %arg3[%c0_2, %c0_3] : memref<64x64xbf16, #tpu.memory_space<vmem>>, vector<64x64xbf16>
    %cst = arith.constant dense<0.000000e+00> : vector<8x64xf32>
    %9 = tpu.matmul %7, %8, %cst {dimension_numbers = #tpu.dot_dimension_numbers<[1], [0], [0], [1], [0, 0, 1, 1], [], []>} : vector<8x64xbf16>, vector<64x64xbf16>, vector<8x64xf32> -> vector<8x64xf32>
    %cst_4 = arith.constant 1.250000e-01 : f32
    %10 = vector.broadcast %cst_4 : f32 to vector<8x64xf32>
    %11 = arith.mulf %9, %10 : vector<8x64xf32>
    %12 = arith.truncf %11 : vector<8x64xf32> to vector<8x64xbf16>
    %c0_5 = arith.constant 0 : index
    %c0_6 = arith.constant 0 : index
    %13 = vector.load %arg9[%c0_5, %c0_6] : memref<16x64xbf16, #tpu.memory_space<vmem>>, vector<16x64xbf16>
    %c0_7 = arith.constant 0 : index
    %c0_8 = arith.constant 0 : index
    %14 = vector.load %arg10[%c0_7, %c0_8] : memref<16x64xbf16, #tpu.memory_space<vmem>>, vector<16x64xbf16>
    %c8_i32_9 = arith.constant 8 : i32
    %15 = arith.muli %arg1, %c8_i32_9 : i32
    %16 = tpu.iota {dimensions = array<i32: 0>} : vector<8x16xi32>
    %17 = vector.broadcast %15 : i32 to vector<8x16xi32>
    %18 = arith.addi %17, %16 : vector<8x16xi32>
    %19 = tpu.iota {dimensions = array<i32: 1>} : vector<8x16xi32>
    %20 = arith.cmpi sle, %19, %18 : vector<8x16xi32>
    %21 = vector.extract_strided_slice %12 {offsets = [0, 0], sizes = [8, 16], strides = [1, 1]} : vector<8x64xbf16> to vector<8x16xbf16>
    %22 = vector.extract_strided_slice %13 {offsets = [0, 0], sizes = [16, 16], strides = [1, 1]} : vector<16x64xbf16> to vector<16x16xbf16>
    %23 = vector.extract_strided_slice %14 {offsets = [0, 0], sizes = [16, 16], strides = [1, 1]} : vector<16x64xbf16> to vector<16x16xbf16>
    %cst_10 = arith.constant dense<0.000000e+00> : vector<8x16xf32>
    %24 = tpu.matmul %21, %22, %cst_10 {dimension_numbers = #tpu.dot_dimension_numbers<[1], [1], [0], [0], [0, 0, 1, 0], [], []>} : vector<8x16xbf16>, vector<16x16xbf16>, vector<8x16xf32> -> vector<8x16xf32>
    %cst_11 = arith.constant -1.000000e+30 : f32
    %25 = vector.broadcast %cst_11 : f32 to vector<8x16xf32>
    %26 = arith.select %20, %24, %25 : vector<8x16xi1>, vector<8x16xf32>
    %cst_12 = arith.constant dense<0xFF800000> : vector<8xf32>
    %27 = vector.multi_reduction <maximumf>, %26, %cst_12 [1] : vector<8x16xf32> to vector<8xf32>
    %28 = vector.shape_cast %27 : vector<8xf32> to vector<8x1xf32>
    %29 = vector.broadcast %28 : vector<8x1xf32> to vector<8x16xf32>
    %30 = arith.subf %26, %29 : vector<8x16xf32>
    %31 = math.exp %30 : vector<8x16xf32>
    %cst_13 = arith.constant dense<0.000000e+00> : vector<8xf32>
    %32 = vector.multi_reduction <add>, %31, %cst_13 [1] : vector<8x16xf32> to vector<8xf32>
    %33 = vector.shape_cast %32 : vector<8xf32> to vector<8x1xf32>
    %34 = arith.truncf %31 : vector<8x16xf32> to vector<8x16xbf16>
    %cst_14 = arith.constant dense<0.000000e+00> : vector<8x16xf32>
    %35 = tpu.matmul %34, %23, %cst_14 {dimension_numbers = #tpu.dot_dimension_numbers<[1], [0], [0], [1], [0, 0, 1, 1], [], []>} : vector<8x16xbf16>, vector<16x16xbf16>, vector<8x16xf32> -> vector<8x16xf32>
    %36 = tpu.reciprocal %33 {approx = true} : vector<8x1xf32> -> vector<8x1xf32>
    %37 = vector.broadcast %36 : vector<8x1xf32> to vector<8x16xf32>
    %38 = arith.mulf %35, %37 : vector<8x16xf32>
    %39 = arith.truncf %38 : vector<8x16xf32> to vector<8x16xbf16>
    %40 = vector.extract_strided_slice %12 {offsets = [0, 16], sizes = [8, 16], strides = [1, 1]} : vector<8x64xbf16> to vector<8x16xbf16>
    %41 = vector.extract_strided_slice %13 {offsets = [0, 16], sizes = [16, 16], strides = [1, 1]} : vector<16x64xbf16> to vector<16x16xbf16>
    %42 = vector.extract_strided_slice %14 {offsets = [0, 16], sizes = [16, 16], strides = [1, 1]} : vector<16x64xbf16> to vector<16x16xbf16>
    %cst_15 = arith.constant dense<0.000000e+00> : vector<8x16xf32>
    %43 = tpu.matmul %40, %41, %cst_15 {dimension_numbers = #tpu.dot_dimension_numbers<[1], [1], [0], [0], [0, 0, 1, 0], [], []>} : vector<8x16xbf16>, vector<16x16xbf16>, vector<8x16xf32> -> vector<8x16xf32>
    %cst_16 = arith.constant -1.000000e+30 : f32
    %44 = vector.broadcast %cst_16 : f32 to vector<8x16xf32>
    %45 = arith.select %20, %43, %44 : vector<8x16xi1>, vector<8x16xf32>
    %cst_17 = arith.constant dense<0xFF800000> : vector<8xf32>
    %46 = vector.multi_reduction <maximumf>, %45, %cst_17 [1] : vector<8x16xf32> to vector<8xf32>
    %47 = vector.shape_cast %46 : vector<8xf32> to vector<8x1xf32>
    %48 = vector.broadcast %47 : vector<8x1xf32> to vector<8x16xf32>
    %49 = arith.subf %45, %48 : vector<8x16xf32>
    %50 = math.exp %49 : vector<8x16xf32>
    %cst_18 = arith.constant dense<0.000000e+00> : vector<8xf32>
    %51 = vector.multi_reduction <add>, %50, %cst_18 [1] : vector<8x16xf32> to vector<8xf32>
    %52 = vector.shape_cast %51 : vector<8xf32> to vector<8x1xf32>
    %53 = arith.truncf %50 : vector<8x16xf32> to vector<8x16xbf16>
    %cst_19 = arith.constant dense<0.000000e+00> : vector<8x16xf32>
    %54 = tpu.matmul %53, %42, %cst_19 {dimension_numbers = #tpu.dot_dimension_numbers<[1], [0], [0], [1], [0, 0, 1, 1], [], []>} : vector<8x16xbf16>, vector<16x16xbf16>, vector<8x16xf32> -> vector<8x16xf32>
    %55 = tpu.reciprocal %52 {approx = true} : vector<8x1xf32> -> vector<8x1xf32>
    %56 = vector.broadcast %55 : vector<8x1xf32> to vector<8x16xf32>
    %57 = arith.mulf %54, %56 : vector<8x16xf32>
    %58 = arith.truncf %57 : vector<8x16xf32> to vector<8x16xbf16>
    %59 = vector.extract_strided_slice %12 {offsets = [0, 32], sizes = [8, 16], strides = [1, 1]} : vector<8x64xbf16> to vector<8x16xbf16>
    %60 = vector.extract_strided_slice %13 {offsets = [0, 32], sizes = [16, 16], strides = [1, 1]} : vector<16x64xbf16> to vector<16x16xbf16>
    %61 = vector.extract_strided_slice %14 {offsets = [0, 32], sizes = [16, 16], strides = [1, 1]} : vector<16x64xbf16> to vector<16x16xbf16>
    %cst_20 = arith.constant dense<0.000000e+00> : vector<8x16xf32>
    %62 = tpu.matmul %59, %60, %cst_20 {dimension_numbers = #tpu.dot_dimension_numbers<[1], [1], [0], [0], [0, 0, 1, 0], [], []>} : vector<8x16xbf16>, vector<16x16xbf16>, vector<8x16xf32> -> vector<8x16xf32>
    %cst_21 = arith.constant -1.000000e+30 : f32
    %63 = vector.broadcast %cst_21 : f32 to vector<8x16xf32>
    %64 = arith.select %20, %62, %63 : vector<8x16xi1>, vector<8x16xf32>
    %cst_22 = arith.constant dense<0xFF800000> : vector<8xf32>
    %65 = vector.multi_reduction <maximumf>, %64, %cst_22 [1] : vector<8x16xf32> to vector<8xf32>
    %66 = vector.shape_cast %65 : vector<8xf32> to vector<8x1xf32>
    %67 = vector.broadcast %66 : vector<8x1xf32> to vector<8x16xf32>
    %68 = arith.subf %64, %67 : vector<8x16xf32>
    %69 = math.exp %68 : vector<8x16xf32>
    %cst_23 = arith.constant dense<0.000000e+00> : vector<8xf32>
    %70 = vector.multi_reduction <add>, %69, %cst_23 [1] : vector<8x16xf32> to vector<8xf32>
    %71 = vector.shape_cast %70 : vector<8xf32> to vector<8x1xf32>
    %72 = arith.truncf %69 : vector<8x16xf32> to vector<8x16xbf16>
    %cst_24 = arith.constant dense<0.000000e+00> : vector<8x16xf32>
    %73 = tpu.matmul %72, %61, %cst_24 {dimension_numbers = #tpu.dot_dimension_numbers<[1], [0], [0], [1], [0, 0, 1, 1], [], []>} : vector<8x16xbf16>, vector<16x16xbf16>, vector<8x16xf32> -> vector<8x16xf32>
    %74 = tpu.reciprocal %71 {approx = true} : vector<8x1xf32> -> vector<8x1xf32>
    %75 = vector.broadcast %74 : vector<8x1xf32> to vector<8x16xf32>
    %76 = arith.mulf %73, %75 : vector<8x16xf32>
    %77 = arith.truncf %76 : vector<8x16xf32> to vector<8x16xbf16>
    %78 = vector.extract_strided_slice %12 {offsets = [0, 48], sizes = [8, 16], strides = [1, 1]} : vector<8x64xbf16> to vector<8x16xbf16>
    %79 = vector.extract_strided_slice %13 {offsets = [0, 48], sizes = [16, 16], strides = [1, 1]} : vector<16x64xbf16> to vector<16x16xbf16>
    %80 = vector.extract_strided_slice %14 {offsets = [0, 48], sizes = [16, 16], strides = [1, 1]} : vector<16x64xbf16> to vector<16x16xbf16>
    %cst_25 = arith.constant dense<0.000000e+00> : vector<8x16xf32>
    %81 = tpu.matmul %78, %79, %cst_25 {dimension_numbers = #tpu.dot_dimension_numbers<[1], [1], [0], [0], [0, 0, 1, 0], [], []>} : vector<8x16xbf16>, vector<16x16xbf16>, vector<8x16xf32> -> vector<8x16xf32>
    %cst_26 = arith.constant -1.000000e+30 : f32
    %82 = vector.broadcast %cst_26 : f32 to vector<8x16xf32>
    %83 = arith.select %20, %81, %82 : vector<8x16xi1>, vector<8x16xf32>
    %cst_27 = arith.constant dense<0xFF800000> : vector<8xf32>
    %84 = vector.multi_reduction <maximumf>, %83, %cst_27 [1] : vector<8x16xf32> to vector<8xf32>
    %85 = vector.shape_cast %84 : vector<8xf32> to vector<8x1xf32>
    %86 = vector.broadcast %85 : vector<8x1xf32> to vector<8x16xf32>
    %87 = arith.subf %83, %86 : vector<8x16xf32>
    %88 = math.exp %87 : vector<8x16xf32>
    %cst_28 = arith.constant dense<0.000000e+00> : vector<8xf32>
    %89 = vector.multi_reduction <add>, %88, %cst_28 [1] : vector<8x16xf32> to vector<8xf32>
    %90 = vector.shape_cast %89 : vector<8xf32> to vector<8x1xf32>
    %91 = arith.truncf %88 : vector<8x16xf32> to vector<8x16xbf16>
    %cst_29 = arith.constant dense<0.000000e+00> : vector<8x16xf32>
    %92 = tpu.matmul %91, %80, %cst_29 {dimension_numbers = #tpu.dot_dimension_numbers<[1], [0], [0], [1], [0, 0, 1, 1], [], []>} : vector<8x16xbf16>, vector<16x16xbf16>, vector<8x16xf32> -> vector<8x16xf32>
    %93 = tpu.reciprocal %90 {approx = true} : vector<8x1xf32> -> vector<8x1xf32>
    %94 = vector.broadcast %93 : vector<8x1xf32> to vector<8x16xf32>
    %95 = arith.mulf %92, %94 : vector<8x16xf32>
    %96 = arith.truncf %95 : vector<8x16xf32> to vector<8x16xbf16>
    %97 = tpu.concatenate %39, %58, %77, %96 in 1 : vector<8x16xbf16>, vector<8x16xbf16>, vector<8x16xbf16>, vector<8x16xbf16> -> vector<8x64xbf16>
    %c0_30 = arith.constant 0 : index
    %c0_31 = arith.constant 0 : index
    %98 = vector.load %arg6[%c0_30, %c0_31] : memref<64x64xbf16, #tpu.memory_space<vmem>>, vector<64x64xbf16>
    %cst_32 = arith.constant dense<0.000000e+00> : vector<8x64xf32>
    %99 = tpu.matmul %97, %98, %cst_32 {dimension_numbers = #tpu.dot_dimension_numbers<[1], [0], [0], [1], [0, 0, 1, 1], [], []>} : vector<8x64xbf16>, vector<64x64xbf16>, vector<8x64xf32> -> vector<8x64xf32>
    %c0_33 = arith.constant 0 : index
    %c0_34 = arith.constant 0 : index
    %100 = vector.load %arg7[%c0_33, %c0_34] : memref<1x64xf32, #tpu.memory_space<vmem>>, vector<1x64xf32>
    %101 = vector.broadcast %100 : vector<1x64xf32> to vector<8x64xf32>
    %102 = arith.addf %99, %101 : vector<8x64xf32>
    %c0_35 = arith.constant 0 : index
    %c0_36 = arith.constant 0 : index
    %c0_37 = arith.constant 0 : index
    %103 = vector.load %arg8[%c0_35, %c0_36, %c0_37] : memref<1x8x64xf32, #tpu.memory_space<vmem>>, vector<1x8x64xf32>
    %104 = vector.shape_cast %103 : vector<1x8x64xf32> to vector<8x64xf32>
    %105 = vector.shape_cast %102 : vector<8x64xf32> to vector<1x8x64xf32>
    tpu.vector_store %arg8[%c0_35, %c0_36, %c0_37], %105 {strides = array<i32>} : memref<1x8x64xf32, #tpu.memory_space<vmem>>, vector<1x8x64xf32>,
    return
  }
  func.func @transform_0(%arg0: i32, %arg1: i32) -> (i32, i32, i32) {
    %c0_i32 = arith.constant 0 : i32
    %c0_i32_0 = arith.constant 0 : i32
    %c0_i32_1 = arith.constant 0 : i32
    return %arg0, %c0_i32, %c0_i32_0 : i32, i32, i32
  }
  func.func @transform_1(%arg0: i32, %arg1: i32) -> (i32, i32) {
    %c0_i32 = arith.constant 0 : i32
    %c0_i32_0 = arith.constant 0 : i32
    %c0_i32_1 = arith.constant 0 : i32
    return %c0_i32, %c0_i32_0 : i32, i32
  }
  func.func @transform_2(%arg0: i32, %arg1: i32) -> (i32, i32) {
    %c0_i32 = arith.constant 0 : i32
    %c0_i32_0 = arith.constant 0 : i32
    %c0_i32_1 = arith.constant 0 : i32
    return %c0_i32, %c0_i32_0 : i32, i32
  }
  func.func @transform_3(%arg0: i32, %arg1: i32) -> (i32, i32) {
    %c0_i32 = arith.constant 0 : i32
    %c0_i32_0 = arith.constant 0 : i32
    %c0_i32_1 = arith.constant 0 : i32
    return %c0_i32, %c0_i32_0 : i32, i32
  }
  func.func @transform_4(%arg0: i32, %arg1: i32) -> (i32, i32) {
    %c0_i32 = arith.constant 0 : i32
    %c0_i32_0 = arith.constant 0 : i32
    %c0_i32_1 = arith.constant 0 : i32
    return %c0_i32, %c0_i32_0 : i32, i32
  }
  func.func @transform_5(%arg0: i32, %arg1: i32) -> (i32, i32) {
    %c0_i32 = arith.constant 0 : i32
    %c0_i32_0 = arith.constant 0 : i32
    %c0_i32_1 = arith.constant 0 : i32
    return %c0_i32, %c0_i32_0 : i32, i32
  }
  func.func @transform_6(%arg0: i32, %arg1: i32) -> (i32, i32, i32) {
    %c0_i32 = arith.constant 0 : i32
    %c0_i32_0 = arith.constant 0 : i32
    return %arg0, %arg1, %c0_i32 : i32, i32, i32
  }
}

</mosaic_0001>

<bundles_post_ra>
// kernel: tpu_custom_call.1
= control target key start
LH: loop header
LB: loop body
LE: loop exit
PB: predicated region body
PF: predicated region fallthrough
CT: control target
= control target key end

     0   :  { %s2385_s0 = inlined_call_operand.hbm [shape: bf16[2,16,64], index: 0, kind: input, shape index: {}]   ;;  %s2386_s1 = inlined_call_operand.hbm [shape: bf16[64,64], index: 1, kind: input, shape index: {}]   ;;  %s2387_s2 = inlined_call_operand.hbm [shape: bf16[64,64], index: 2, kind: input, shape index: {}]   ;;  %s2388_s3 = inlined_call_operand.hbm [shape: bf16[64,64], index: 3, kind: input, shape index: {}]   ;;  %s2389_s4 = inlined_call_operand.hbm [shape: bf16[64,64], index: 4, kind: input, shape index: {}]   ;;  %s2390_s5 = inlined_call_operand.vmem [shape: f32[1,64], index: 5, kind: input, shape index: {}]   ;;  %s2391_s6 = inlined_call_operand.hbm [shape: f32[2,16,64], index: 6, kind: output, shape index: {}]  }
   0x1   :  { %2399 = sst [smem:[#allocation22_spill]] %s2386_s1 }
   0x2   :  { %2400 = sst [smem:[#allocation23_spill]] %s2387_s2 }
   0x3   :  { %2401 = sst [smem:[#allocation24_spill]] %s2388_s3 }
   0x4   :  { %2402 = sst [smem:[#allocation25_spill]] %s2389_s4 }
   0x5   :  { %2403 = sst [smem:[#allocation26_spill]] %s2390_s5 }
   0x6   :  { %2404 = sst [smem:[#allocation27_spill]] %s2391_s6 }
   0x7   :  { %11 = vsyncpa [#allocation5], 0 }
   0x8   :  { %13 = vsyncpa [#allocation5 + $0x1], 0 }
   0x9   :  { %14 = vsyncpa [#allocation8], 0 }
   0xa   :  { %15 = vsyncpa [#allocation11], 0 }
   0xb   :  { %16 = vsyncpa [#allocation6], 0 }
   0xc   :  { %18 = vsyncpa [#allocation6 + $0x1], 0  ;;  %s2009_s21 = smov 0   ;;  %s2011_s22 = smov 0  }
   0xd   :  { %s2013_s23 = smov 0   ;;  %s2015_s24 = smov 0  }
   0xe   :  { %s2017_s25 = smov 0   ;;  %s2019_s26 = smov 0  }
   0xf   :  { %s2021_s27 = smov 0   ;;  %s2023_s28 = smov 0  }
  0x10   :  { %s2025_s29 = smov 0   ;;  %s2027_s30 = smov 0  }
  0x11   :  { %s2029_s7 = smov 0  }
  0x12 LB: > { %2405 = sst [smem:[#allocation18_spill]] %s1914_s21  ;;  %s1305_s8 = sadd.s32 4294967295, %s1954_s7   ;;  %s1954_s7 = sphi %s2029_s7, %s24_s7   ;;  %s1950_s30 = sphi %s2027_s30, %s2437_s30   ;;  %s1946_s29 = sphi %s2025_s29, %s2429_s29   ;;  %s1942_s28 = sphi %s2023_s28, %s2436_s28   ;;  %s1938_s27 = sphi %s2021_s27, %s2428_s27   ;;  %s1934_s26 = sphi %s2019_s26, %s2435_s26   ;;  %s1930_s25 = sphi %s2017_s25, %s2434_s25   ;;  %s1926_s24 = sphi %s2015_s24, %s2433_s24   ;;  %s1922_s23 = sphi %s2013_s23, %s2432_s23   ;;  %s1918_s22 = sphi %s2011_s22, %s2431_s22   ;;  %s1914_s21 = sphi %s2009_s21, %s2430_s21  }
  0x13   : > { %2406 = sst [smem:[#allocation19_spill]] %s1946_s29  ;;  %s1306_s9 = sadd.s32 4294967294, %s1954_s7  }
  0x14   : > { %p56_p0 = scmp.ne.s32.totalorder %s1930_s25, %s1926_s24  ;;  %p2065_p1 = scmp.eq.s32.totalorder %s1305_s8, 0 }
  0x15   : > { %p186_p2 = scmp.ne.s32.totalorder %s1922_s23, %s1918_s22  ;;  %p187_p3 = scmp.eq.s32.totalorder %s1305_s8, 3 }
  0x16   : > { %p2073_p4 = por %p2065_p1, %p56_p0  ;;  %p192_p5 = scmp.ne.s32.totalorder %s1918_s22, %s1914_s21 }
  0x17   : > { %p2079_p6 = por %p187_p3, %p186_p2  ;;  %p193_p7 = scmp.eq.s32.totalorder %s1306_s9, 3 }
  0x18   : > { %p1307_p8 = scmp.ge.s32.totalorder %s1954_s7, 1  ;;  %p200_p9 = scmp.lt.s32.totalorder %s1954_s7, 5 }
  0x19   : > { %p2085_p10 = por %p193_p7, %p192_p5  ;;  %s1956_s15 = smov [#allocation7]  }
  0x1a   : > { %p2089_p11 = pnand %p1307_p8, %p200_p9  ;;  %s212_s16 = sshll.u32 %s1956_s15, 4  ;;  %s213_s16 = int_to_ptr.vmem [resolvable:$true] %s212_s16 }
  0x1b   : > { %s2410_s13 = scalar_select %p2085_p10, 1, 0 }
  0x1c   : > { %p1524_p12 = pneg %p2089_p11  ;;  %s1957_s18 = smov [#allocation10]  }
  0x1d   : > { %2411 = sst [smem:[#allocation20_spill]] %s2410_s13  ;;  %s238_s19 = sshll.u32 %s1957_s18, 4  ;;  %s239_s19 = int_to_ptr.vmem [resolvable:$true] %s238_s19 }
  0x1e   : > { %p2097_p13 = pnand %p1524_p12, %p2065_p1  ;;  %s1705_s20 = scalar_lea.vmem %s213_s16, 512 }
  0x1f   : > { %p1706_p2 = scmp.ne.s32.totalorder %s213_s16, %s1705_s20  ;;  %p1713_p7 = scmp.lt.s32.totalorder %s213_s16, %s213_s16 }
  0x20   : > { %p1696_p0 = pneg %p2097_p13  ;;  %p1714_p8 = scmp.lt.s32.totalorder %s1705_s20, %s1705_s20 }
  0x22   : > { %p1708_p3 = pnand %p1706_p2, %p1696_p0  ;;  %p1715_p9 = por %p1714_p8, %p1713_p7 }
  0x24   : > { %p1709_p5 = pneg %p1708_p3 }
  0x26   : > { %p1716_p12 = pnand %p1715_p9, %p1709_p5 }
  0x28   : > { %1719 = shalt.err (!%p1716_p12)
}
  0x29   : > { %s2394_s24 = smov 64   ;;  %s2395_s8 = smov 4  }
  0x2a   : > { %s2414_s1 = sld [smem:[#allocation22_spill]]  ;;  %s1731_s18 = scalar_lea.vmem %s239_s19, 512 }
  0x2b   : > { %p1732_p2 = scmp.ne.s32.totalorder %s239_s19, %s1731_s18  ;;  %p1739_p5 = scmp.lt.s32.totalorder %s239_s19, %s239_s19 }
  0x2c   : > { %p1740_p8 = scmp.lt.s32.totalorder %s1731_s18, %s1731_s18 }
  0x2d   : > { %p1734_p3 = pnand %p1732_p2, %p1696_p0 }
  0x2e   : > { %p1741_p9 = por %p1740_p8, %p1739_p5 }
  0x2f   : > { %p1735_p7 = pneg %p1734_p3 }
  0x30   : > { %1527 = dma.hbm_to_vmem [thread:$0]  (!%p2097_p13), %s2414_s1, 512, %s213_s16, [#allocation8], %s2394_s24, %s2394_s24, %s2395_s8  }
  0x31   : > { %p1742_p12 = pnand %p1741_p9, %p1735_p7 }
  0x33   : > { %1745 = shalt.err (!%p1742_p12)
}
  0x34   : > { %s2415_s3 = sld [smem:[#allocation24_spill]]  ;;  %s1960_s16 = smov [#allocation9]  }
  0x35   : > { %s225_s9 = sshll.u32 %s1960_s16, 4  ;;  %s1961_s15 = smov [#allocation12]   ;;  %s226_s9 = int_to_ptr.vmem [resolvable:$true] %s225_s9 }
  0x36   : > { %s251_s1 = sshll.u32 %s1961_s15, 4  ;;  %s1757_s21 = scalar_lea.vmem %s226_s9, 512  ;;  %s252_s1 = int_to_ptr.vmem [resolvable:$true] %s251_s1 }
  0x37   : > { %p1758_p2 = scmp.ne.s32.totalorder %s226_s9, %s1757_s21  ;;  %p1765_p5 = scmp.lt.s32.totalorder %s226_s9, %s226_s9 }
  0x38   : > { %p1766_p8 = scmp.lt.s32.totalorder %s1757_s21, %s1757_s21 }
  0x39   : > { %p1760_p3 = pnand %p1758_p2, %p1696_p0 }
  0x3a   : > { %1533 = dma.hbm_to_vmem [thread:$0]  (!%p2097_p13), %s2415_s3, 512, %s239_s19, [#allocation11], %s2394_s24, %s2394_s24, %s2395_s8  }
  0x3b   : > { %p1761_p7 = pneg %p1760_p3  ;;  %p1767_p9 = por %p1766_p8, %p1765_p5 }
  0x3d   : > { %p1768_p12 = pnand %p1767_p9, %p1761_p7 }
  0x3f   : > { %1771 = shalt.err (!%p1768_p12)
}
  0x40   : > { %s2416_s2 = sld [smem:[#allocation23_spill]]  ;;  %s1783_s18 = scalar_lea.vmem %s252_s1, 512 }
  0x41   : > { %p1784_p10 = scmp.ne.s32.totalorder %s252_s1, %s1783_s18  ;;  %p1791_p5 = scmp.lt.s32.totalorder %s252_s1, %s252_s1 }
  0x42   : > { %p1792_p7 = scmp.lt.s32.totalorder %s1783_s18, %s1783_s18 }
  0x43   : > { %p1786_p2 = pnand %p1784_p10, %p1696_p0 }
  0x44   : > { %p1793_p8 = por %p1792_p7, %p1791_p5 }
  0x45   : > { %p1787_p3 = pneg %p1786_p2 }
  0x46   : > { %1530 = dma.hbm_to_vmem [thread:$0]  (!%p2097_p13), %s2416_s2, 512, %s226_s9, [#allocation8], %s2394_s24, %s2394_s24, %s2395_s8  }
  0x47   : > { %p1794_p9 = pnand %p1793_p8, %p1787_p3 }
  0x49   : > { %1797 = shalt.err (!%p1794_p9)
}
  0x4a   : > { %s2417_s4 = sld [smem:[#allocation25_spill]]  ;;  %s33_s17 = sadd.s32 1, %s1946_s29 }
  0x4b   : > { %p34_p10 = scmp.ge.s32.totalorder %s33_s17, 2  ;;  %s36_s16 = sadd.s32 1, %s1950_s30 }
  0x4c   : > { %s43_s9 = sadd.s32 1, %s1934_s26  ;;  %p50_p0 = scmp.ne.s32.totalorder %s1934_s26, %s1930_s25 }
  0x4d   : > { %s2439_s17 = smov (%p34_p10, %s33_s17), 0  ;;  %s2441_s16 = smov (!%p34_p10, %s36_s16), %s1950_s30 }
  0x4e   : > { %2418 = sst [smem:[#allocation21_spill]] %s2439_s17  ;;  %p51_p12 = scmp.eq.s32.totalorder %s1954_s7, 0 }
  0x4f   : > { %s172_s15 = ssub.s32 %s1946_s29, %s2439_s17  ;;  %p38_p2 = scmp.ge.s32.totalorder %s2441_s16, 2 }
  0x50   : > { %1536 = dma.hbm_to_vmem [thread:$0]  (!%p2097_p13), %s2417_s4, 512, %s252_s1, [#allocation11], %s2394_s24, %s2394_s24, %s2395_s8  }
  0x51   : > { %s176_s13 = sadd.s32 1, %s1922_s23  ;;  %p2159_p3 = por %p51_p12, %p50_p0 }
  0x52   : > { %p1549_p13 = scmp.lt.s32.totalorder %s1954_s7, 4  ;;  %s2443_s16 = smov (%p38_p2, %s2441_s16), 0 }
  0x53   : > { %s268_s19 = sand.u32 1, %s1934_s26   ;;  %s1367_s18 = sshll.u32 %s1950_s30, 7 }
  0x54   : > { %s40_s21 = ssub.s32 %s1950_s30, %s2443_s16  ;;  %s1313_s24 = sshll.u32 %s268_s19, 3 }
  0x55   : > { %p41_p5 = scmp.eq.s32.totalorder %s40_s21, 0  ;;  %s173_s20 = sor.u32 %s172_s15, %s40_s21 }
  0x56   : > { %p174_p7 = scmp.eq.s32.totalorder %s173_s20, 0  ;;  %s278_s17 = scalar_lea.hbm %s2385_s0, %s1367_s18 }
  0x57   : > { %s2171_s8 = scalar_select %p41_p5, %s1934_s26, %s43_s9  }
  0x58   : > { %s2174_s2 = scalar_select %p174_p7, %s1922_s23, %s176_s13  }
  0x59   : > { %s272_s29 = scalar_lea.vmem [#allocation4], %s1313_s24  ;;  %p2183_p8 = pnand %p1549_p13, %p2159_p3 }
  0x5a   : > { %s279_s6 = sshll.u32 %s272_s29, 4  ;;  %s269_s15 = scalar_lea.sflag [#allocation5], %s268_s19  ;;  %s280_s6 = int_to_ptr.vmem [resolvable:$true] %s279_s6 }
  0x5b   : > { %p1800_p9 = pneg %p2183_p8  ;;  %s1811_s9 = scalar_lea.vmem %s280_s6, 128 }
  0x5c   : > { %p1812_p10 = scmp.ne.s32.totalorder %s280_s6, %s1811_s9  ;;  %s1962_s13 = smov [#allocation4]  }
  0x5d   : > { %s1816_s3 = sshll.u32 %s1962_s13, 4  ;;  %s1817_s3 = int_to_ptr.vmem [resolvable:$false] %s1816_s3 }
  0x5e   : > { %p1814_p0 = pnand %p1812_p10, %p1800_p9  ;;  %s1818_s4 = scalar_lea.vmem %s1817_s3, 256 }
  0x5f   : > { %p1819_p2 = scmp.lt.s32.totalorder %s280_s6, %s1817_s3  ;;  %p1820_p5 = scmp.lt.s32.totalorder %s1818_s4, %s1811_s9 }
  0x60   : > { %p1815_p12 = pneg %p1814_p0 }
  0x61   : > { %p1821_p7 = por %p1820_p5, %p1819_p2 }
  0x63   : > { %p1822_p3 = pnand %p1821_p7, %p1815_p12 }
  0x65   : > { %1825 = shalt.err (!%p1822_p3)
}
  0x66   : > { %s2421_s29 = smov 4   ;;  %s2422_s24 = smov 64  }
  0x67   : > { %1540 = dma.hbm_to_vmem [thread:$0]  (!%p2183_p8), %s278_s17, 128, %s280_s6, %s269_s15, %s2422_s24, %s2422_s24, %s2421_s29  }
  0x68   : > { %291 = sbr.rel (%p2089_p11) target bundleno = 1805 (0x70d), region = 44  ;;  %s293_s1 = sand.u32 (!%p2089_p11), 1, %s1930_s25  }
  0x69   : > { %s2197_s19 = sshll.u32 (!%p2089_p11), %s293_s1, 3  ;;  %s294_s18 = scalar_lea.sflag (!%p2089_p11), [#allocation5], %s293_s1 }
  0x6a   : > { %s297_s21 = scalar_lea.vmem (!%p2089_p11), [#allocation4], %s2197_s19 }
  0x6d   : > { %1897 = dma.done.wait (%p2073_p4), %s294_s18, 128  }
  0x6e   : > { %1899 = vsyncadd (%p2073_p4), %s294_s18, 4294967168 }
  0x6f   : > { %1901 = dma.done.wait (%p2065_p1), [#allocation8], 1024  }
  0x70   : > { %1903 = vsyncadd (%p2065_p1), [#allocation8], 4294966272 }
  0x71   : > { %1905 = dma.done.wait (%p2065_p1), [#allocation11], 1024  }
  0x72   : > { %1907 = vsyncadd (%p2065_p1), [#allocation11], 4294966272  ;;  %s339_s5 = sand.u32 1, %s1918_s22   ;;  %p1323_p4 = scmp.ne.s32.totalorder %s1938_s27, 0 }
  0x73   : > { %s2215_s6 = sshll.u32 %s339_s5, 3 }
  0x74   : > { %s341_s11 = scalar_lea.vmem [#allocation13], %s2215_s6  ;;  %346 = sbr.rel (%p1323_p4) target bundleno = 339 (0x153), region = 68 }
  0x79   : > { %v1659_v0 = vld [vmem:[#allocation9 + $0x18] sm:$0xff]   ;;  %v1963_v1 = vmov 0.0   ;;  %v1661_v3 = vld [vmem:[#allocation9 + $0x10] sm:$0xff]   ;;  %vm1964_vm0 = vmmov 0   ;;  %v1663_v5 = vld [vmem:[#allocation9 + $0x8] sm:$0xff]   ;;  %vm386_vm1 = vcmask 523264  }
  0x7a   : > { %1408 = vmatprep.subr.bf16.mxu0 %v1963_v1  ;;  %1420 = vmatprep.subr.bf16.mxu1 %v1963_v1  ;;  %v1660_v2 = vld [vmem:[#allocation10 + $0x18] sm:$0xff]   ;;  %v1662_v4 = vld [vmem:[#allocation10 + $0x10] sm:$0xff]   ;;  %v1664_v6 = vld [vmem:[#allocation10 + $0x8] sm:$0xff]   ;;  %vm439_vm2 = vcmask 519168  }
  0x7b   : > { %1409 = vmatpush3.bf16.msra.mxu0 %v1659_v0  ;;  %1416 = vmatprep.mubr.msk.bf16.mxu0 %vm1964_vm0, %v1963_v1  ;;  %v1665_v7 = vld [vmem:[#allocation9] sm:$0xff]   ;;  %v1667_v9 = vld [vmem:[%s297_s21] sm:$0xff]  }
  0x7c   : > { %1421 = vmatpush3.bf16.msra.mxu1 %v1660_v2  ;;  %1410 = vmatprep.subr.bf16.mxu0 %v1963_v1  ;;  %v1666_v8 = vld [vmem:[#allocation10] sm:$0xff]  }
  0x7d   : > { %1422 = vmatprep.subr.bf16.mxu1 %v1963_v1  ;;  %1428 = vmatprep.mubr.msk.bf16.mxu1 %vm1964_vm0, %v1963_v1 }
  0x7f   : > { %1411 = vmatpush3.bf16.msra.mxu0 %v1661_v3 }
  0x80   : > { %1423 = vmatpush3.bf16.msra.mxu1 %v1662_v4  ;;  %1412 = vmatprep.subr.bf16.mxu0 %v1963_v1 }
  0x81   : > { %1424 = vmatprep.subr.bf16.mxu1 %v1963_v1 }
  0x83   : > { %1413 = vmatpush3.bf16.msra.mxu0 %v1663_v5 }
  0x84   : > { %1425 = vmatpush3.bf16.msra.mxu1 %v1664_v6  ;;  %1414 = vmatprep.subr.bf16.mxu0 %v1963_v1 }
  0x85   : > { %1426 = vmatprep.subr.bf16.mxu1 %v1963_v1 }
  0x87   : > { %1415 = vmatpush3.bf16.msra.mxu0 %v1665_v7 }
  0x88   : > { %1427 = vmatpush3.bf16.msra.mxu1 %v1666_v8 }
  0x8a   : > { %1417 = vmatmul.mubr.msk.bf16.vlgmr.msra.gmra.mxu0 %vm386_vm1, %v1667_v9 }
  0x8b   : > { %1429 = vmatmul.mubr.msk.bf16.vlgmr.msra.gmra.mxu1 %vm386_vm1, %v1667_v9 }
 0x14a   : > { %v424_v10 = vpop.f32.mrf.mxu0 }
 0x14b   : > { %v1368_v11 = vpack.c.bf16 %v424_v10, %v424_v10  ;;  %v508_v12 = vpop.f32.mrf.mxu1 }
 0x14c   : > { %v1370_v13 = vpack.c.bf16 %v508_v12, %v508_v12  ;;  %v1418_v14 = vpop.f32.mrf.mxu0 }
 0x14d   : > { %440 = vst.msk [vmem:[#allocation2] sm:$0xf] %vm439_vm2, %v1368_v11  ;;  %v1430_v15 = vpop.f32.mrf.mxu1 }
 0x14e   : > { %523 = vst.msk [vmem:[#allocation3] sm:$0xf] %vm439_vm2, %v1370_v13  ;;  %v427_v16 = vpop.f32.mrf.mxu0 }
 0x14f   : > { %v1369_v17 = vpack.c.bf16 %v427_v16, %v427_v16  ;;  %v511_v18 = vpop.f32.mrf.mxu1 }
 0x150   : > { %v1371_v19 = vpack.c.bf16 %v511_v18, %v511_v18  ;;  %v1419_v20 = vpop.f32.mrf.mxu0 }
 0x151   : > { %441 = vst.msk [vmem:[#allocation2 + $0x4] sm:$0xf] %vm439_vm2, %v1369_v17  ;;  %v1431_v21 = vpop.f32.mrf.mxu1 }
 0x152   : > { %524 = vst.msk [vmem:[#allocation3 + $0x4] sm:$0xf] %vm439_vm2, %v1371_v19 }
 0x153 PF: > { %v1668_v22 = vld [vmem:[#allocation7 + $0x18] sm:$0xff]   ;;  %v1965_v23 = vmov 0.0   ;;  %v1669_v24 = vld [vmem:[#allocation7 + $0x10] sm:$0xff]   ;;  %vm1966_vm3 = vmmov 0   ;;  %s1339_s10 = sshll.u32 %s1938_s27, 3  ;;  %vm625_vm4 = vcmask 130048   ;;  %v613_v43 = vlaneseq }
 0x154   : > { %1432 = vmatprep.subr.bf16.mxu0 %v1965_v23  ;;  %1444 = vmatprep.subr.bf16.mxu1 %v1965_v23  ;;  %s526_s14 = sshra.s32 %s1339_s10, 3  ;;  %v1670_v26 = vld [vmem:[#allocation7 + $0x8] sm:$0xff]   ;;  %v1671_v28 = vld [vmem:[#allocation7] sm:$0xff]   ;;  %vm563_vm5 = vcmask 523264   ;;  %s1967_s15 = smov 112   ;;  %v615_v45 = vstv %s1339_s10  ;;  %vm1078_vm7 = vcmask 261120  }
 0x155   : > { %1433 = vmatpush3.bf16.msra.mxu0 %v1668_v22  ;;  %1440 = vmatprep.mubr.msk.bf16.mxu0 %vm1966_vm3, %v1965_v23  ;;  %s1340_s17 = sshll.u32 %s526_s14, 2  ;;  %s1968_s9 = smov 96   ;;  %v614_v44 = vshrl.u32 %v613_v43, 7  ;;  %v618_v47 = vand.u32 127, %v613_v43  ;;  %vm1081_vm8 = vcmask 392192  }
 0x156   : > { %1434 = vmatprep.subr.bf16.mxu0 %v1965_v23  ;;  %1446 = vmatprep.mubr.msk.bf16.mxu1 %vm1966_vm3, %v1965_v23  ;;  %s529_s20 = scalar_lea.vmem %s297_s21, %s1340_s17 [#allocation4]  ;;  %s1969_s13 = smov 80  }
 0x157   : > { %v530_v29 = vld [vmem:[%s529_s20] sm:$0xf]  ;;  %v616_v46 = vadd.s32 %v615_v45, %v614_v44  ;;  %v1674_v45 = vld [vmem:[#allocation12 + $0x18] sm:$0xff]   ;;  %s1970_s3 = smov 16   ;;  %s1971_s4 = smov 32  }
 0x158   : > { %v2231_v25 = vld [vmem:[#allocation2] sm:$0xff]   ;;  %s1972_s29 = smov 48   ;;  %s1363_s24 = sshll.u32 %s1942_s28, 1 }
 0x159   : > { %1435 = vmatpush3.bf16.msra.mxu0 %v1669_v24  ;;  %v630_v27 = vsel %vm625_vm4, %v2231_v25, 0  ;;  %vm619_vm6 = vcmp.le.s32.totalorder %v618_v47, %v616_v46  ;;  %v1673_v54 = vld [vmem:[#allocation3] sm:$0xff]   ;;  %v1675_v46 = vld [vmem:[#allocation12 + $0x10] sm:$0xff]   ;;  %s1178_s1 = sadd.s32 %s1938_s27, %s1363_s24  ;;  %s2423_s21 = sld [smem:[#allocation26_spill]] }
 0x15a   : > { %1436 = vmatprep.subr.bf16.mxu0 %v1965_v23  ;;  %1445 = vmatpush3.bf16.xpose.msra.mxu1 %v630_v27  ;;  %s1364_s10 = sshll.u32 %s1178_s1, 7  ;;  %s1182_s14 = sshll.u32 %s341_s11, 4  ;;  %s2321_s14 = int_to_ptr.vmem [resolvable:$true] %s1182_s14 }
 0x15b   : > { %1450 = vmatprep.subr.bf16.mxu1 %v1965_v23  ;;  %s1167_s27 = scalar_lea.sflag [#allocation6], %s339_s5  ;;  %s1826_s28 = scalar_lea.vmem %s2321_s14, 128 }
 0x15c   : > { %p1827_p1 = scmp.ne.s32.totalorder %s2321_s14, %s1826_s28 }
 0x15d   : > { %1437 = vmatpush3.bf16.msra.mxu0 %v1670_v26 }
 0x15e   : > { %1438 = vmatprep.subr.bf16.mxu0 %v1965_v23  ;;  %p1828_p11 = pnand %p1827_p1, %p2079_p6 }
 0x160   : > { %p1829_p13 = pneg %p1828_p11 }
 0x161   : > { %1439 = vmatpush3.bf16.msra.mxu0 %v1671_v28 }
 0x162   : > { %1468 = vmatprep.subr.bf16.mxu0 %v1965_v23 }
 0x164   : > { %1441 = vmatmul.mubr.msk.bf16.vlgmr.msra.gmra.mxu0 %vm563_vm5, %v530_v29 }
 0x165   : > { %1470 = vmatprep.mubr.msk.bf16.mxu0 %vm1966_vm3, %v1965_v23 }
 0x224   : > { %v601_v30 = vpop.f32.mrf.mxu0 }
 0x225   : > { %v607_v31 = vmul.f32 0.125, %v601_v30 }
 0x226   : > { %v1442_v32 = vpop.f32.mrf.mxu0 }
 0x227   : > { %v608_v33 = vpack.c.bf16 %v607_v31, %v607_v31 }
 0x228   : > { %v604_v34 = vpop.f32.mrf.mxu0 }
 0x229   : > { %736 = vrot.lane.b32.xlu1 %v608_v33, %s1967_s15  ;;  %1447 = vmatmul.mubr.msk.bf16.vlgmr.msra.gmra.mxu1 %vm625_vm4, %v608_v33 }
 0x22a   : > { %v1443_v35 = vpop.f32.mrf.mxu0  ;;  %1452 = vmatprep.mubr.msk.bf16.mxu1 %vm1966_vm3, %v1965_v23  ;;  %1451 = vmatpush3.bf16.msra.mxu1 %v1673_v54 }
 0x22b   : > { %1456 = vmatprep.subr.bf16.mxu1 %v1965_v23 }
 0x22d   : > { %848 = vrot.lane.b32.xlu1 %v2231_v25, %s1968_s9 }
 0x231   : > { %846 = vrot.lane.b32.xlu1 %v608_v33, %s1968_s9 }
 0x235   : > { %958 = vrot.lane.b32.xlu1 %v2231_v25, %s1969_s13 }
 0x239   : > { %956 = vrot.lane.b32.xlu1 %v608_v33, %s1969_s13 }
 0x29b   : > { %v737_v36 = vpop.permute.xlu1 %736 }
 0x29f   : > { %v849_v37 = vpop.permute.xlu1 %848 }
 0x2a0   : > { %v854_v38 = vsel %vm625_vm4, %v849_v37, 0 }
 0x2a1   : > { %1469 = vmatpush3.bf16.xpose.msra.mxu0 %v854_v38 }
 0x2a2   : > { %1480 = vmatprep.subr.bf16.mxu0 %v1965_v23 }
 0x2a3   : > { %v847_v39 = vpop.permute.xlu1 %846 }
 0x2a7   : > { %v959_v40 = vpop.permute.xlu1 %958 }
 0x2a8   : > { %v964_v41 = vsel %vm625_vm4, %v959_v40, 0  ;;  %1471 = vmatmul.mubr.msk.bf16.vlgmr.msra.gmra.mxu0 %vm625_vm4, %v847_v39 }
 0x2a9   : > { %1481 = vmatpush3.bf16.xpose.msra.mxu0 %v964_v41  ;;  %1482 = vmatprep.mubr.msk.bf16.mxu0 %vm1966_vm3, %v1965_v23 }
 0x2aa   : > { %1492 = vmatprep.subr.bf16.mxu0 %v1965_v23 }
 0x2ab   : > { %v957_v42 = vpop.permute.xlu1 %956 }
 0x2b0   : > { %1483 = vmatmul.mubr.msk.bf16.vlgmr.msra.gmra.mxu0 %vm625_vm4, %v957_v42 }
 0x2b1   : > { %1500 = vmatprep.mubr.msk.bf16.mxu0 %vm1966_vm3, %v1965_v23  ;;  %1493 = vmatpush3.bf16.msra.mxu0 %v1674_v45 }
 0x2b2   : > { %1494 = vmatprep.subr.bf16.mxu0 %v1965_v23 }
 0x2b5   : > { %1495 = vmatpush3.bf16.msra.mxu0 %v1675_v46 }
 0x2b6   : > { %1496 = vmatprep.subr.bf16.mxu0 %v1965_v23 }
 0x2e9   : > { %v666_v48 = vpop.f32.mrf.mxu1 }
 0x2ea   : > { %v672_v49 = vsel %vm619_vm6, %v666_v48, -1e+30 }
 0x2eb   : > { %v1448_v50 = vpop.f32.mrf.mxu1  ;;  %v673_v51 = vsel %vm625_vm4, %v672_v49, -inf }
 0x2ec   : > { %674 = vmax.xlane.f32.xlu0 %v673_v51  ;;  %v1676_v50 = vld [vmem:[#allocation12 + $0x8] sm:$0xff]  }
 0x2ed   : > { %v669_v52 = vpop.f32.mrf.mxu1  ;;  %1497 = vmatpush3.bf16.msra.mxu0 %v1676_v50 }
 0x2ee   : > { %1498 = vmatprep.subr.bf16.mxu0 %v1965_v23 }
 0x2ef   : > { %v1449_v53 = vpop.f32.mrf.mxu1 }
 0x2f0   : > { %v1677_v53 = vld [vmem:[#allocation12] sm:$0xff]  }
 0x2f1   : > { %1499 = vmatpush3.bf16.msra.mxu0 %v1677_v53 }
 0x302   : > { %738 = vrot.lane.b32.xlu0 %v2231_v25, %s1967_s15 }
 0x368   : > { %v890_v55 = vpop.f32.mrf.mxu0 }
 0x369   : > { %v896_v56 = vsel %vm619_vm6, %v890_v55, -1e+30 }
 0x36a   : > { %v1472_v57 = vpop.f32.mrf.mxu0  ;;  %v897_v58 = vsel %vm625_vm4, %v896_v56, -inf }
 0x36b   : > { %898 = vmax.xlane.f32.xlu0 %v897_v58 }
 0x36c   : > { %v893_v59 = vpop.f32.mrf.mxu0 }
 0x36e   : > { %v1473_v60 = vpop.f32.mrf.mxu0 }
 0x370   : > { %v1000_v61 = vpop.f32.mrf.mxu0 }
 0x371   : > { %v1006_v16 = vsel %vm619_vm6, %v1000_v61, -1e+30 }
 0x372   : > { %v1484_v62 = vpop.f32.mrf.mxu0  ;;  %v1007_v19 = vsel %vm625_vm4, %v1006_v16, -inf }
 0x374   : > { %v1003_v63 = vpop.f32.mrf.mxu0 }
 0x375   : > { %v675_v0 = vpop.xlane.xlu0 %674 }
 0x376   : > { %v676_v1 = vsub.f32 %v672_v49, %v675_v0  ;;  %v1485_v2 = vpop.f32.mrf.mxu0 }
 0x378   : > { %v677_v3 = vmul.f32 1.442695, %v676_v1 }
 0x379   : > { %v739_v4 = vpop.permute.xlu0 %738 }
 0x37a   : > { %1678 = vpow2.f32 %v677_v3  ;;  %v744_v6 = vsel %vm625_vm4, %v739_v4, 0 }
 0x381   : > { %797 = vrot.lane.b32.xlu0 %v1673_v54, %s1967_s15  ;;  %s2424_s15 = sld [smem:[#allocation27_spill]] }
 0x387   : > { %v1679_v5 = vpop.eup %1678 }
 0x388   : > { %v682_v7 = vpack.c.bf16 %v1679_v5, %v1679_v5  ;;  %v679_v39 = vsel %vm625_vm4, %v1679_v5, 0.0 }
 0x38a   : > { %1453 = vmatmul.mubr.msk.bf16.vlgmr.msra.gmra.mxu1 %vm625_vm4, %v682_v7 }
 0x38b   : > { %1457 = vmatpush3.bf16.xpose.msra.mxu1 %v744_v6  ;;  %1458 = vmatprep.mubr.msk.bf16.mxu1 %vm1966_vm3, %v1965_v23 }
 0x38c   : > { %1462 = vmatprep.subr.bf16.mxu1 %v1965_v23 }
 0x392   : > { %1459 = vmatmul.mubr.msk.bf16.vlgmr.msra.gmra.mxu1 %vm625_vm4, %v737_v36 }
 0x393   : > { %1464 = vmatprep.mubr.msk.bf16.mxu1 %vm1966_vm3, %v1965_v23 }
 0x3f4   : > { %v899_v20 = vpop.xlane.xlu0 %898 }
 0x3f5   : > { %v900_v22 = vsub.f32 %v896_v56, %v899_v20 }
 0x3f7   : > { %v901_v24 = vmul.f32 1.442695, %v900_v22 }
 0x3f8   : > { %v798_v21 = vpop.permute.xlu0 %797 }
 0x3f9   : > { %1463 = vmatpush3.bf16.msra.mxu1 %v798_v21  ;;  %1680 = vpow2.f32 %v901_v24 }
 0x3fa   : > { %1474 = vmatprep.subr.bf16.mxu1 %v1965_v23 }
 0x406   : > { %v1681_v25 = vpop.eup %1680 }
 0x407   : > { %v903_v26 = vsel %vm625_vm4, %v1681_v25, 0.0  ;;  %v906_v41 = vpack.c.bf16 %v1681_v25, %v1681_v25 }
 0x44a   : > { %v2282_v8 = vpop.f32.mrf.mxu1 }
 0x44c   : > { %v1454_v9 = vpop.f32.mrf.mxu1 }
 0x44e   : > { %v729_v10 = vpop.f32.mrf.mxu1 }
 0x450   : > { %v1455_v11 = vpop.f32.mrf.mxu1 }
 0x452   : > { %v780_v12 = vpop.f32.mrf.mxu1 }
 0x453   : > { %v786_v13 = vsel %vm619_vm6, %v780_v12, -1e+30 }
 0x454   : > { %v1460_v14 = vpop.f32.mrf.mxu1  ;;  %v787_v15 = vsel %vm625_vm4, %v786_v13, -inf }
 0x455   : > { %788 = vmax.xlane.f32.xlu1 %v787_v15 }
 0x456   : > { %v783_v17 = vpop.f32.mrf.mxu1 }
 0x458   : > { %v1461_v18 = vpop.f32.mrf.mxu1 }
 0x459   : > { %1008 = vmax.xlane.f32.xlu1 %v1007_v19 }
 0x46a   : > { %907 = vrot.lane.b32.xlu1 %v1673_v54, %s1968_s9  ;;  %s2319_s9 = scalar_lea.hbm %s2424_s15, %s1364_s10 }
 0x46e   : > { %1017 = vrot.lane.b32.xlu1 %v1673_v54, %s1969_s13  ;;  %s1973_s13 = smov [#allocation13]  }
 0x492   : > { %904 = vadd.xlane.f32.xlu1 %v903_v26 }
 0x4de   : > { %v789_v27 = vpop.xlane.xlu1 %788 }
 0x4df   : > { %v790_v28 = vsub.f32 %v786_v13, %v789_v27 }
 0x4e1   : > { %v791_v29 = vmul.f32 1.442695, %v790_v28 }
 0x4e2   : > { %v1009_v30 = vpop.xlane.xlu1 %1008 }
 0x4e3   : > { %1682 = vpow2.f32 %v791_v29  ;;  %v1010_v31 = vsub.f32 %v1006_v16, %v1009_v30 }
 0x4e5   : > { %v1011_v32 = vmul.f32 1.442695, %v1010_v31 }
 0x4e6   : > { %v908_v35 = vpop.permute.xlu1 %907 }
 0x4e7   : > { %1684 = vpow2.f32 %v1011_v32 }
 0x4ea   : > { %v1018_v40 = vpop.permute.xlu1 %1017 }
 0x4f0   : > { %v1683_v33 = vpop.eup %1682 }
 0x4f1   : > { %v793_v34 = vsel %vm625_vm4, %v1683_v33, 0.0  ;;  %v796_v36 = vpack.c.bf16 %v1683_v33, %v1683_v33 }
 0x4f2   : > { %794 = vadd.xlane.f32.xlu0 %v793_v34 }
 0x4f3   : > { %1465 = vmatmul.mubr.msk.bf16.vlgmr.msra.gmra.mxu1 %vm625_vm4, %v796_v36 }
 0x4f4   : > { %v1685_v37 = vpop.eup %1684  ;;  %1475 = vmatpush3.bf16.msra.mxu1 %v908_v35  ;;  %1476 = vmatprep.mubr.msk.bf16.mxu1 %vm1966_vm3, %v1965_v23 }
 0x4f5   : > { %v1013_v38 = vsel %vm625_vm4, %v1685_v37, 0.0  ;;  %1486 = vmatprep.subr.bf16.mxu1 %v1965_v23  ;;  %v1016_v42 = vpack.c.bf16 %v1685_v37, %v1685_v37 }
 0x4f6   : > { %1014 = vadd.xlane.f32.xlu0 %v1013_v38 }
 0x4fa   : > { %680 = vadd.xlane.f32.xlu0 %v679_v39 }
 0x4fb   : > { %1477 = vmatmul.mubr.msk.bf16.vlgmr.msra.gmra.mxu1 %vm625_vm4, %v906_v41 }
 0x4fc   : > { %1487 = vmatpush3.bf16.msra.mxu1 %v1018_v40  ;;  %1488 = vmatprep.mubr.msk.bf16.mxu1 %vm1966_vm3, %v1965_v23 }
 0x503   : > { %1489 = vmatmul.mubr.msk.bf16.vlgmr.msra.gmra.mxu1 %vm625_vm4, %v1016_v42 }
 0x51b   : > { %v905_v44 = vpop.xlane.xlu1 %904 }
 0x57b   : > { %v795_v43 = vpop.xlane.xlu0 %794 }
 0x57c   : > { %1686 = vrcp.f32 %v795_v43 }
 0x57d   : > { %1688 = vrcp.f32 %v905_v44 }
 0x57f   : > { %v1015_v48 = vpop.xlane.xlu0 %1014 }
 0x580   : > { %1690 = vrcp.f32 %v1015_v48 }
 0x583   : > { %v681_v6 = vpop.xlane.xlu0 %680 }
 0x584   : > { %1692 = vrcp.f32 %v681_v6 }
 0x589   : > { %v1687_v47 = vpop.eup %1686 }
 0x58a   : > { %v1689_v57 = vpop.eup %1688 }
 0x58d   : > { %v1691_v0 = vpop.eup %1690 }
 0x591   : > { %v1693_v7 = vpop.eup %1692 }
 0x592   : > { %v733_v9 = vmul.f32 %v1693_v7, %v2282_v8  ;;  %v1356_v8 = vld [vmem:[%s2423_s21] ss:$0 sm:$0xff] }
 0x594   : > { %v734_v11 = vpack.c.bf16 %v733_v9, %v733_v9 }
 0x5b3   : > { %v837_v49 = vpop.f32.mrf.mxu1 }
 0x5b4   : > { %v844_v51 = vmul.f32 %v1687_v47, %v837_v49 }
 0x5b5   : > { %v1466_v52 = vpop.f32.mrf.mxu1 }
 0x5b6   : > { %v845_v54 = vpack.c.bf16 %v844_v51, %v844_v51 }
 0x5b7   : > { %v840_v55 = vpop.f32.mrf.mxu1 }
 0x5b8   : > { %1067 = vrot.lane.b32.xlu1 %v845_v54, %s1970_s3  ;;  %s1830_s3 = sshll.u32 %s1973_s13, 4  ;;  %s1831_s3 = int_to_ptr.vmem [resolvable:$false] %s1830_s3 }
 0x5b9   : > { %v1467_v56 = vpop.f32.mrf.mxu1  ;;  %p1833_p8 = scmp.lt.s32.totalorder %s2321_s14, %s1831_s3 }
 0x5bb   : > { %v947_v58 = vpop.f32.mrf.mxu1 }
 0x5bc   : > { %v954_v59 = vmul.f32 %v1689_v57, %v947_v58 }
 0x5bd   : > { %v1478_v60 = vpop.f32.mrf.mxu1 }
 0x5be   : > { %v955_v61 = vpack.c.bf16 %v954_v59, %v954_v59 }
 0x5bf   : > { %v950_v62 = vpop.f32.mrf.mxu1 }
 0x5c0   : > { %1070 = vrot.lane.b32.xlu0 %v955_v61, %s1971_s4  ;;  %s1832_s4 = scalar_lea.vmem %s1831_s3, 256 }
 0x5c1   : > { %v1479_v63 = vpop.f32.mrf.mxu1  ;;  %p1834_p9 = scmp.lt.s32.totalorder %s1832_s4, %s1826_s28 }
 0x5c3   : > { %v1057_v1 = vpop.f32.mrf.mxu1  ;;  %p1835_p10 = por %p1834_p9, %p1833_p8 }
 0x5c4   : > { %v1064_v2 = vmul.f32 %v1691_v0, %v1057_v1 }
 0x5c5   : > { %v1490_v3 = vpop.f32.mrf.mxu1  ;;  %p1836_p0 = pnand %p1835_p10, %p1829_p13 }
 0x5c6   : > { %v1065_v4 = vpack.c.bf16 %v1064_v2, %v1064_v2 }
 0x5c7   : > { %v1060_v23 = vpop.f32.mrf.mxu1 }
 0x5c8   : > { %1073 = vrot.lane.b32.xlu1 %v1065_v4, %s1972_s29 }
 0x5c9   : > { %v1491_v5 = vpop.f32.mrf.mxu1 }
 0x62a   : > { %v1068_v10 = vpop.permute.xlu1 %1067 }
 0x62b   : > { %v1077_v13 = vsel %vm625_vm4, %v734_v11, %v1068_v10 }
 0x632   : > { %v1071_v12 = vpop.permute.xlu0 %1070 }
 0x633   : > { %v1080_v14 = vsel %vm1078_vm7, %v1077_v13, %v1071_v12 }
 0x63a   : > { %v1074_v15 = vpop.permute.xlu1 %1073 }
 0x63b   : > { %v1083_v16 = vsel %vm1081_vm8, %v1080_v14, %v1074_v15 }
 0x63c   : > { %1501 = vmatmul.mubr.msk.bf16.vlgmr.msra.gmra.mxu0 %vm563_vm5, %v1083_v16 }
 0x6fc   : > { %v1159_v17 = vpop.f32.mrf.mxu0 }
 0x6fd   : > { %v1160_v18 = vadd.f32 %v1356_v8, %v1159_v17 }
 0x6fe   : > { %v1502_v19 = vpop.f32.mrf.mxu0 }
 0x6ff   : > { %1165 = vst.msk [vmem:[%s341_s11] sm:$0xff] %vm563_vm5, %v1160_v18 }
 0x700   : > { %v1162_v20 = vpop.f32.mrf.mxu0 }
 0x701   : > { %1839 = shalt.err (!%p1836_p0)
}
 0x702   : > { %s1840_s6 = scalar_lea.hbm %s2319_s9, 128  ;;  %s1844_s29 = scalar_lea.hbm %s2424_s15, 512 }
 0x703   : > { %p1841_p12 = scmp.ne.s32.totalorder %s2319_s9, %s1840_s6  ;;  %p1845_p7 = scmp.lt.s32.totalorder %s2319_s9, %s2424_s15 }
 0x704   : > { %p1846_p3 = scmp.lt.s32.totalorder %s1844_s29, %s1840_s6 }
 0x705   : > { %p1842_p2 = pnand %p1841_p12, %p2079_p6 }
 0x706   : > { %p1847_p4 = por %p1846_p3, %p1845_p7 }
 0x707   : > { %p1843_p5 = pneg %p1842_p2 }
 0x709   : > { %p1848_p1 = pnand %p1847_p4, %p1843_p5 }
 0x70b   : > { %1851 = shalt.err (!%p1848_p1)
}
 0x70c   : > { %1522 = dma.vmem_to_hbm [thread:$0]  (%p2079_p6), %s2321_s14, 128, %s2319_s9, %s1167_s27   ;;  %v1503_v21 = vpop.f32.mrf.mxu0 }
 0x70d PF: > { %s2425_s19 = sld [smem:[#allocation18_spill]]  ;;  %p1554_p11 = scmp.ge.s32.totalorder %s1954_s7, 2 }
 0x70e   : > { %s2426_s18 = sld [smem:[#allocation20_spill]] }
 0x713   : > { %s1194_s21 = sand.u32 1, %s2425_s19  }
 0x714   : > { %p2427_p13 = scmp.ne.s32.totalorder %s2426_s18, 0  ;;  %s1195_s10 = scalar_lea.sflag [#allocation6], %s1194_s21 }
 0x716   : > { %p1542_p8 = pnand %p1554_p11, %p2427_p13 }
 0x718   : > { %p1543_p9 = pneg %p1542_p8 }
 0x71a   : > { %1909 = dma.done.wait (%p1543_p9), %s1195_s10, 128  }
 0x71b   : > { %1911 = vsyncadd (%p1543_p9), %s1195_s10, 4294967168  ;;  %s24_s7 = sadd.s32 1, %s1954_s7   ;;  %s2428_s27 = sld [smem:[#allocation19_spill]] }
 0x71c   : > { %p21_p10 = scmp.ge.s32.totalorder %s24_s7, 6   ;;  %s2429_s29 = sld [smem:[#allocation21_spill]] }
 0x71d   : > { %s2430_s21 = smov %s1918_s22  ;;  %s2431_s22 = smov %s1922_s23 }
 0x71e   : > { %s2432_s23 = smov %s2174_s2  ;;  %s2433_s24 = smov %s1930_s25 }
 0x71f   : > { %s2434_s25 = smov %s1934_s26  ;;  %s2435_s26 = smov %s2171_s8 }
 0x720   : > { %s2436_s28 = smov %s1950_s30  ;;  %s2437_s30 = smov %s2443_s16 }
 0x721   :  { %23 = sbr.rel (!%p21_p10) target bundleno = 18 (0x12), region = 110 }
 0x726   :  { %1200 = vsyncpa [#allocation5], 1 }
 0x727   :  { %1202 = vsyncpa [#allocation5 + $0x1], 1 }
 0x728   :  { %1203 = vsyncpa [#allocation8], 1 }
 0x729   :  { %1204 = vsyncpa [#allocation11], 1 }
 0x72a   :  { %1205 = vsyncpa [#allocation6], 1 }
 0x72b   :  { %1207 = vsyncpa [#allocation6 + $0x1], 1 }

</bundles_post_ra>
